<compile_context>
chip_gen: v7x
topology: tpu7x:2x2x1
jax: 0.10.0
libtpu: 0.0.40
codegen_flags: <defaults>
</compile_context>

<pallas_src>
import jax
import jax.numpy as jnp
from jax.experimental import pallas as pl
from jax.experimental.pallas import tpu as pltpu

INPUT_FEATURES = 28 * 28   # 784
HIDDEN = 64
OUTPUT_FEATURES = 10

HIDDEN_PAD = 128           # HIDDEN padded to a full lane group
OUT_PAD = 128              # OUTPUT_FEATURES padded for lane-dense stores


def _round_up(n, m):
    return (n + m - 1) // m * m


def mlp_kernel(x_ref, w1_ref, b1_ref, w2_ref, b2_ref, o_ref):
    # Cast x to bf16 in-kernel (no wrapper copy); f32 accumulation on the MXU.
    x = x_ref[...].astype(jnp.bfloat16)
    h = jnp.dot(x, w1_ref[...], preferred_element_type=jnp.float32)
    h = jnp.maximum(h + b1_ref[...], 0.0)            # bias (f32) + ReLU
    out = jnp.dot(h.astype(jnp.bfloat16), w2_ref[...],
                  preferred_element_type=jnp.float32)
    out = out + b2_ref[...]
    o_ref[...] = out.astype(o_ref.dtype)              # bf16 lane-dense store


def prepare_params(w1, b1, w2, b2):
    """One-time padding/casting of the weights (hoisted out of the fwd path).

    w1: (IN, HIDDEN), b1: (HIDDEN,), w2: (HIDDEN, OUT), b2: (OUT,)
    (weights stored transposed vs. torch's nn.Linear (out, in) layout).
    Zero padding is mathematically inert: ReLU(0)=0 and zero rows/cols of w2/w1
    contribute nothing.
    """
    IN, H = w1.shape
    OUT = w2.shape[1]
    w1_p = jnp.zeros((IN, HIDDEN_PAD), jnp.bfloat16).at[:, :H].set(
        w1.astype(jnp.bfloat16))
    b1_p = jnp.zeros((1, HIDDEN_PAD), jnp.float32).at[0, :H].set(
        b1.astype(jnp.float32))
    w2_p = jnp.zeros((HIDDEN_PAD, OUT_PAD), jnp.bfloat16).at[:H, :OUT].set(
        w2.astype(jnp.bfloat16))
    b2_p = jnp.zeros((1, OUT_PAD), jnp.float32).at[0, :OUT].set(
        b2.astype(jnp.float32))
    return w1_p, b1_p, w2_p, b2_p


def _choose_tile_b(B, tile_b):
    if tile_b is None:
        tile_b = 1024                       # sweet spot per review (512-1024)
    tile_b = max(16, _round_up(tile_b, 16))  # bf16 packs 16 rows / sublane group
    # Don't over-pad small batches.
    tile_b = min(tile_b, _round_up(B, 16))
    # v7x has 2 TensorCores: keep >= 2 grid steps whenever the batch allows so
    # the "parallel" axis actually spans both cores.
    if B > 16:
        tile_b = min(tile_b, max(16, _round_up((B + 1) // 2, 16)))
    return tile_b


def mlp_forward(x, params, *, tile_b=None, n_out=OUTPUT_FEATURES):
    """relu(x @ w1 + b1) @ w2 + b2 with pre-prepared (padded) params."""
    w1_p, b1_p, w2_p, b2_p = params
    B, IN = x.shape

    tile_b = _choose_tile_b(B, tile_b)
    B_pad = _round_up(B, tile_b)

    # Pad the batch only if needed; keep x's dtype (cast happens in-kernel).
    x_in = x if B_pad == B else jnp.pad(x, ((0, B_pad - B), (0, 0)))

    grid = (B_pad // tile_b,)
    x_bytes = x_in.dtype.itemsize

    cost = pl.CostEstimate(
        flops=2 * B_pad * IN * HIDDEN_PAD + 2 * B_pad * HIDDEN_PAD * OUT_PAD,
        transcendentals=0,
        bytes_accessed=(B_pad * IN * x_bytes          # x read
                        + IN * HIDDEN_PAD * 2         # w1
                        + HIDDEN_PAD * OUT_PAD * 2    # w2
                        + HIDDEN_PAD * 4 + OUT_PAD * 4
                        + B_pad * OUT_PAD * 2),       # bf16 output write
    )

    cp_kwargs = dict(dimension_semantics=("parallel",))
    if tile_b > 1024:
        # Double-buffered f32 x tiles above 1024 rows exceed v5e's 16 MiB
        # scoped-VMEM default; raise the limit explicitly for such requests.
        cp_kwargs["vmem_limit_bytes"] = 64 * 1024 * 1024

    out_padded = pl.pallas_call(
        mlp_kernel,
        out_shape=jax.ShapeDtypeStruct((B_pad, OUT_PAD), jnp.bfloat16),
        grid_spec=pl.GridSpec(
            grid=grid,
            in_specs=[
                # x tiles stream over the batch grid.
                pl.BlockSpec((tile_b, IN), lambda i: (i, 0)),
                # Weights / biases: constant index_map -> VMEM-resident.
                pl.BlockSpec((IN, HIDDEN_PAD), lambda i: (0, 0)),
                pl.BlockSpec((1, HIDDEN_PAD), lambda i: (0, 0)),
                pl.BlockSpec((HIDDEN_PAD, OUT_PAD), lambda i: (0, 0)),
                pl.BlockSpec((1, OUT_PAD), lambda i: (0, 0)),
            ],
            out_specs=pl.BlockSpec((tile_b, OUT_PAD), lambda i: (i, 0)),
        ),
        compiler_params=pltpu.CompilerParams(**cp_kwargs),
        cost_estimate=cost,
    )(x_in, w1_p, b1_p, w2_p, b2_p)

    # Drop batch/lane padding; return f32 logits like the torch module.
    return out_padded[:B, :n_out].astype(jnp.float32)


def init_linear(key, fan_in, fan_out):
    """PyTorch nn.Linear default init: U(-1/sqrt(fan_in), 1/sqrt(fan_in))."""
    kw, kb = jax.random.split(key)
    bound = 1.0 / jnp.sqrt(fan_in)
    # Stored already transposed: (fan_in, fan_out), i.e. W.T of torch's (out, in).
    w = jax.random.uniform(kw, (fan_in, fan_out), jnp.float32, -bound, bound)
    b = jax.random.uniform(kb, (fan_out,), jnp.float32, -bound, bound)
    return w, b


if __name__ == "__main__":
    key = jax.random.PRNGKey(0)
    kx, k1, k2 = jax.random.split(key, 3)

    B = 64  # small demo batch; tile heuristic picks tile_b=32 -> 2-step grid
    x = jax.random.normal(kx, (B, INPUT_FEATURES), jnp.float32)
    w1, b1 = init_linear(k1, INPUT_FEATURES, HIDDEN)
    w2, b2 = init_linear(k2, HIDDEN, OUTPUT_FEATURES)

    params = prepare_params(w1, b1, w2, b2)   # one-time pad/cast
    out = mlp_forward(x, params)
    jax.block_until_ready(out)
    assert out.shape == (B, OUTPUT_FEATURES)
    assert out.dtype == jnp.float32

    # Authoritative reference: same bf16 operand rounding, f32 accumulation,
    # bf16 output rounding (matches the kernel's numerics).
    xb = x.astype(jnp.bfloat16).astype(jnp.float32)
    w1b = w1.astype(jnp.bfloat16).astype(jnp.float32)
    w2b = w2.astype(jnp.bfloat16).astype(jnp.float32)
    h_ref = jnp.maximum(xb @ w1b + b1, 0.0)
    ref = (h_ref.astype(jnp.bfloat16).astype(jnp.float32) @ w2b + b2)
    ref = ref.astype(jnp.bfloat16).astype(jnp.float32)
    assert jnp.allclose(out, ref, atol=2e-2, rtol=2e-2), (
        float(jnp.max(jnp.abs(out - ref))))

    print("KERNEL_OK")
</pallas_src>

<mosaic_0001>
module attributes {stable_mosaic.version = 11 : i64} {
  func.func @mlp_kernel(%arg0: i32, %arg1: memref<32x784xf32, #tpu.memory_space<vmem>>, %arg2: memref<784x128xbf16, #tpu.memory_space<vmem>>, %arg3: memref<1x128xf32, #tpu.memory_space<vmem>>, %arg4: memref<128x128xbf16, #tpu.memory_space<vmem>>, %arg5: memref<1x128xf32, #tpu.memory_space<vmem>>, %arg6: memref<32x128xbf16, #tpu.memory_space<vmem>>) attributes {dimension_semantics = [#tpu.dimension_semantics<parallel>], iteration_bounds = array<i64: 2>, scalar_prefetch = 0 : i64, scratch_operands = 0 : i64, tpu.core_type = #tpu.core_type<tc>, window_params = [{transform_indices = @transform_0, window_bounds = array<i64: 32, 784>}, {pipeline_mode = #tpu.pipeline_mode<synchronous>, transform_indices = @transform_1, window_bounds = array<i64: 784, 128>}, {pipeline_mode = #tpu.pipeline_mode<synchronous>, transform_indices = @transform_2, window_bounds = array<i64: 1, 128>}, {pipeline_mode = #tpu.pipeline_mode<synchronous>, transform_indices = @transform_3, window_bounds = array<i64: 128, 128>}, {pipeline_mode = #tpu.pipeline_mode<synchronous>, transform_indices = @transform_4, window_bounds = array<i64: 1, 128>}, {transform_indices = @transform_5, window_bounds = array<i64: 32, 128>}]} {
    %c0 = arith.constant 0 : index
    %c0_0 = arith.constant 0 : index
    %0 = vector.load %arg1[%c0, %c0_0] : memref<32x784xf32, #tpu.memory_space<vmem>>, vector<32x784xf32>
    %1 = arith.truncf %0 : vector<32x784xf32> to vector<32x784xbf16>
    %c0_1 = arith.constant 0 : index
    %c0_2 = arith.constant 0 : index
    %2 = vector.load %arg2[%c0_1, %c0_2] : memref<784x128xbf16, #tpu.memory_space<vmem>>, vector<784x128xbf16>
    %cst = arith.constant dense<0.000000e+00> : vector<32x128xf32>
    %3 = tpu.matmul %1, %2, %cst {dimension_numbers = #tpu.dot_dimension_numbers<[1], [0], [0], [1], [0, 0, 1, 1], [], []>} : vector<32x784xbf16>, vector<784x128xbf16>, vector<32x128xf32> -> vector<32x128xf32>
    %c0_3 = arith.constant 0 : index
    %c0_4 = arith.constant 0 : index
    %4 = vector.load %arg3[%c0_3, %c0_4] : memref<1x128xf32, #tpu.memory_space<vmem>>, vector<1x128xf32>
    %5 = vector.broadcast %4 : vector<1x128xf32> to vector<32x128xf32>
    %6 = arith.addf %3, %5 : vector<32x128xf32>
    %cst_5 = arith.constant 0.000000e+00 : f32
    %7 = vector.broadcast %cst_5 : f32 to vector<32x128xf32>
    %8 = arith.maximumf %6, %7 : vector<32x128xf32>
    %9 = arith.truncf %8 : vector<32x128xf32> to vector<32x128xbf16>
    %c0_6 = arith.constant 0 : index
    %c0_7 = arith.constant 0 : index
    %10 = vector.load %arg4[%c0_6, %c0_7] : memref<128x128xbf16, #tpu.memory_space<vmem>>, vector<128x128xbf16>
    %cst_8 = arith.constant dense<0.000000e+00> : vector<32x128xf32>
    %11 = tpu.matmul %9, %10, %cst_8 {dimension_numbers = #tpu.dot_dimension_numbers<[1], [0], [0], [1], [0, 0, 1, 1], [], []>} : vector<32x128xbf16>, vector<128x128xbf16>, vector<32x128xf32> -> vector<32x128xf32>
    %c0_9 = arith.constant 0 : index
    %c0_10 = arith.constant 0 : index
    %12 = vector.load %arg5[%c0_9, %c0_10] : memref<1x128xf32, #tpu.memory_space<vmem>>, vector<1x128xf32>
    %13 = vector.broadcast %12 : vector<1x128xf32> to vector<32x128xf32>
    %14 = arith.addf %11, %13 : vector<32x128xf32>
    %15 = arith.truncf %14 : vector<32x128xf32> to vector<32x128xbf16>
    %c0_11 = arith.constant 0 : index
    %c0_12 = arith.constant 0 : index
    %16 = vector.load %arg6[%c0_11, %c0_12] : memref<32x128xbf16, #tpu.memory_space<vmem>>, vector<32x128xbf16>
    tpu.vector_store %arg6[%c0_11, %c0_12], %15 {strides = array<i32>} : memref<32x128xbf16, #tpu.memory_space<vmem>>, vector<32x128xbf16>,
    return
  }
  func.func @transform_0(%arg0: i32) -> (i32, i32) {
    %c0_i32 = arith.constant 0 : i32
    %c0_i32_0 = arith.constant 0 : i32
    return %arg0, %c0_i32 : i32, i32
  }
  func.func @transform_1(%arg0: i32) -> (i32, i32) {
    %c0_i32 = arith.constant 0 : i32
    %c0_i32_0 = arith.constant 0 : i32
    %c0_i32_1 = arith.constant 0 : i32
    return %c0_i32, %c0_i32_0 : i32, i32
  }
  func.func @transform_2(%arg0: i32) -> (i32, i32) {
    %c0_i32 = arith.constant 0 : i32
    %c0_i32_0 = arith.constant 0 : i32
    %c0_i32_1 = arith.constant 0 : i32
    return %c0_i32, %c0_i32_0 : i32, i32
  }
  func.func @transform_3(%arg0: i32) -> (i32, i32) {
    %c0_i32 = arith.constant 0 : i32
    %c0_i32_0 = arith.constant 0 : i32
    %c0_i32_1 = arith.constant 0 : i32
    return %c0_i32, %c0_i32_0 : i32, i32
  }
  func.func @transform_4(%arg0: i32) -> (i32, i32) {
    %c0_i32 = arith.constant 0 : i32
    %c0_i32_0 = arith.constant 0 : i32
    %c0_i32_1 = arith.constant 0 : i32
    return %c0_i32, %c0_i32_0 : i32, i32
  }
  func.func @transform_5(%arg0: i32) -> (i32, i32) {
    %c0_i32 = arith.constant 0 : i32
    %c0_i32_0 = arith.constant 0 : i32
    return %arg0, %c0_i32 : i32, i32
  }
}

</mosaic_0001>

<bundles_post_ra>
// kernel: tpu_custom_call.1
= control target key start
LH: loop header
LB: loop body
LE: loop exit
PB: predicated region body
PF: predicated region fallthrough
CT: control target
= control target key end

     0   :  { %10 = vsyncpa [#allocation3], 0  ;;  %s1995_s0 = inlined_call_operand.hbm [shape: f32[64,784], index: 0, kind: input, shape index: {}]   ;;  %s1996_s1 = inlined_call_operand.hbm [shape: bf16[784,128], index: 1, kind: input, shape index: {}]   ;;  %s1997_s2 = inlined_call_operand.vmem [shape: f32[1,128], index: 2, kind: input, shape index: {}]   ;;  %s1998_s3 = inlined_call_operand.hbm [shape: bf16[128,128], index: 3, kind: input, shape index: {}]   ;;  %s1999_s4 = inlined_call_operand.vmem [shape: f32[1,128], index: 4, kind: input, shape index: {}]   ;;  %s2000_s5 = inlined_call_operand.hbm [shape: bf16[64,128], index: 5, kind: output, shape index: {}]  }
   0x1   :  { %12 = vsyncpa [#allocation3 + $0x1], 0 }
   0x2   :  { %13 = vsyncpa [#allocation6], 0 }
   0x3   :  { %14 = vsyncpa [#allocation4], 0 }
   0x4   :  { %16 = vsyncpa [#allocation4 + $0x1], 0  ;;  %s1724_s18 = smov 0   ;;  %s1726_s19 = smov 0  }
   0x5   :  { %s1728_s20 = smov 0   ;;  %s1730_s21 = smov 0  }
   0x6 LB: > { %s1745_s22 = sadd.s32 4294967295, %s1682_s21   ;;  %s1172_s23 = sadd.s32 4294967294, %s1682_s21   ;;  %s1682_s21 = sphi %s1730_s21, %s2020_s21   ;;  %s1678_s20 = sphi %s1728_s20, %s2019_s20   ;;  %s1674_s19 = sphi %s1726_s19, %s2018_s19   ;;  %s1670_s18 = sphi %s1724_s18, %s2017_s18  }
   0x7   : > { %p42_p0 = scmp.ne.s32.totalorder %s1674_s19, %s1670_s18  ;;  %p2001_p1 = scmp.eq.s32.totalorder %s1745_s22, 0 }
   0x8   : > { %p156_p3 = scmp.eq.s32.totalorder %s1172_s23, 1  ;;  %p1173_p5 = scmp.ge.s32.totalorder %s1682_s21, 1 }
   0x9   : > { %p1754_p4 = por %p2001_p1, %p42_p0  ;;  %p163_p7 = scmp.lt.s32.totalorder %s1682_s21, 3 }
   0xa   : > { %p1759_p6 = por %p156_p3, %p42_p0  ;;  %s1684_s27 = smov [#allocation5]  }
   0xb   : > { %s2004_s24 = scalar_select %p1754_p4, 1, 0 }
   0xc   : > { %s2005_s25 = scalar_select %p1759_p6, 1, 0 }
   0xd   : > { %p1764_p8 = pnand %p1173_p5, %p163_p7  ;;  %s175_s28 = sshll.u32 %s1684_s27, 4  ;;  %s1768_s28 = int_to_ptr.vmem [resolvable:$true] %s175_s28 }
   0xe   : > { %s1685_s30 = smov [#allocation7]   ;;  %s1526_s9 = scalar_lea.hbm %s1996_s1, 6272 }
   0xf   : > { %p1408_p9 = pneg %p1764_p8  ;;  %s191_s6 = sshll.u32 %s1685_s30, 4  ;;  %s1779_s6 = int_to_ptr.vmem [resolvable:$true] %s191_s6 }
  0x10   : > { %p1527_p12 = scmp.ne.s32.totalorder %s1996_s1, %s1526_s9  ;;  %p1533_p5 = scmp.lt.u32.totalorder %s1526_s9, %s1996_s1 }
  0x11   : > { %p1775_p11 = pnand %p1408_p9, %p2001_p1 }
  0x13   : > { %p1528_p13 = pneg %p1775_p11 }
  0x15   : > { %p1529_p0 = pnand %p1528_p13, %p1527_p12 }
  0x17   : > { %p1530_p3 = pneg %p1529_p0 }
  0x19   : > { %p1535_p7 = pnand %p1533_p5, %p1530_p3 }
  0x1b   : > { %1538 = shalt.err (!%p1535_p7)
}
  0x1c   : > { %s1539_s14 = scalar_lea.vmem %s1768_s28, 6272  ;;  %p1547_p2 = scmp.lt.s32.totalorder %s1768_s28, %s1768_s28 }
  0x1d   : > { %p1540_p9 = scmp.ne.s32.totalorder %s1768_s28, %s1539_s14  ;;  %p1548_p12 = scmp.lt.s32.totalorder %s1539_s14, %s1539_s14 }
  0x1f   : > { %p1542_p10 = pnand %p1540_p9, %p1528_p13  ;;  %p1549_p0 = por %p1548_p12, %p1547_p2 }
  0x21   : > { %p1543_p1 = pneg %p1542_p10 }
  0x23   : > { %p1550_p6 = pnand %p1549_p0, %p1543_p1 }
  0x25   : > { %1553 = shalt.err (!%p1550_p6)
}
  0x26   : > { %s1686_s15 = smov 64   ;;  %s1687_s16 = smov 4  }
  0x27   : > { %1411 = dma.hbm_to_vmem [thread:$0]  (!%p1775_p11), %s1996_s1, 6272, %s1768_s28, [#allocation6], %s1686_s15, %s1686_s15, %s1687_s16  }
  0x28   : > { %s1554_s7 = scalar_lea.hbm %s1998_s3, 1024 }
  0x29   : > { %p1555_p2 = scmp.ne.s32.totalorder %s1998_s3, %s1554_s7  ;;  %p1561_p10 = scmp.lt.u32.totalorder %s1554_s7, %s1998_s3 }
  0x2b   : > { %p1557_p1 = pnand %p1555_p2, %p1528_p13 }
  0x2d   : > { %p1558_p6 = pneg %p1557_p1 }
  0x2f   : > { %p1563_p3 = pnand %p1561_p10, %p1558_p6 }
  0x31   : > { %1566 = shalt.err (!%p1563_p3)
}
  0x32   : > { %s1567_s28 = scalar_lea.vmem %s1779_s6, 1024  ;;  %p1575_p12 = scmp.lt.s32.totalorder %s1779_s6, %s1779_s6 }
  0x33   : > { %p1568_p5 = scmp.ne.s32.totalorder %s1779_s6, %s1567_s28  ;;  %p1576_p0 = scmp.lt.s32.totalorder %s1567_s28, %s1567_s28 }
  0x35   : > { %p1570_p7 = pnand %p1568_p5, %p1528_p13  ;;  %p1577_p2 = por %p1576_p0, %p1575_p12 }
  0x37   : > { %p1571_p9 = pneg %p1570_p7 }
  0x39   : > { %p1578_p1 = pnand %p1577_p2, %p1571_p9 }
  0x3b   : > { %1581 = shalt.err (!%p1578_p1)
}
  0x3c   : > { %1414 = dma.hbm_to_vmem [thread:$0]  (!%p1775_p11), %s1998_s3, 1024, %s1779_s6, [#allocation6], %s1686_s15, %s1686_s15, %s1687_s16  }
  0x3d   : > { %s1834_s14 = sadd.s32 1, %s1682_s21   ;;  %s29_s29 = sadd.s32 1, %s1678_s20 }
  0x3e   : > { %s26_s17 = ssub.s32 %s1682_s21, %s1834_s14  ;;  %p36_p13 = scmp.ne.s32.totalorder %s1678_s20, %s1674_s19 }
  0x3f   : > { %p27_p6 = scmp.eq.s32.totalorder %s26_s17, 0  ;;  %p37_p10 = scmp.eq.s32.totalorder %s1682_s21, 0 }
  0x40   : > { %p2008_p3 = scmp.eq.s32.totalorder %s1745_s22, 1  ;;  %p1425_p7 = scmp.lt.s32.totalorder %s1682_s21, 2 }
  0x41   : > { %s1850_s27 = scalar_select %p27_p6, %s1678_s20, %s29_s29  }
  0x42   : > { %p1844_p5 = por %p2008_p3, %p36_p13  ;;  %p38_p9 = por %p37_p10, %p36_p13 }
  0x43   : > { %s208_s30 = sand.u32 1, %s1678_s20   ;;  %s1394_s6 = smul.u32 3584, %s1682_s21 }
  0x44   : > { %s2009_s23 = scalar_select %p1844_p5, 1, 0 }
  0x45   : > { %s1393_s7 = smul.u32 224, %s208_s30  ;;  %p1854_p11 = pnand %p1425_p7, %p38_p9 }
  0x46   : > { %s1861_s9 = scalar_lea.hbm %s1995_s0, %s1394_s6  ;;  %s1865_s28 = scalar_lea.sflag [#allocation3], %s208_s30 }
  0x47   : > { %s212_s10 = scalar_lea.vmem [#allocation2], %s1393_s7  ;;  %s1582_s12 = scalar_lea.hbm %s1861_s9, 3584 }
  0x48   : > { %s220_s11 = sshll.u32 %s212_s10, 4  ;;  %p1583_p12 = scmp.ne.s32.totalorder %s1861_s9, %s1582_s12  ;;  %s1863_s11 = int_to_ptr.vmem [resolvable:$true] %s220_s11 }
  0x49   : > { %p1584_p0 = pneg %p1854_p11  ;;  %s1587_s17 = scalar_lea.hbm %s1995_s0, 7168 }
  0x4a   : > { %p1588_p13 = scmp.lt.u32.totalorder %s1861_s9, %s1995_s0  ;;  %p1589_p6 = scmp.lt.u32.totalorder %s1587_s17, %s1582_s12 }
  0x4b   : > { %p1585_p2 = pnand %p1584_p0, %p1583_p12  ;;  %p1591_p3 = scmp.lt.u32.totalorder %s1582_s12, %s1861_s9 }
  0x4c   : > { %p1590_p10 = por %p1589_p6, %p1588_p13 }
  0x4d   : > { %p1586_p1 = pneg %p1585_p2 }
  0x4e   : > { %p1592_p7 = por %p1591_p3, %p1590_p10 }
  0x50   : > { %p1593_p9 = pnand %p1592_p7, %p1586_p1 }
  0x52   : > { %1596 = shalt.err (!%p1593_p9)
}
  0x53   : > { %s1597_s30 = scalar_lea.vmem %s1863_s11, 3584  ;;  %s1688_s7 = smov [#allocation2]  }
  0x54   : > { %p1598_p12 = scmp.ne.s32.totalorder %s1863_s11, %s1597_s30  ;;  %s1602_s8 = sshll.u32 %s1688_s7, 4  ;;  %s1603_s8 = int_to_ptr.vmem [resolvable:$false] %s1602_s8 }
  0x55   : > { %s1604_s10 = scalar_lea.vmem %s1603_s8, 7168  ;;  %p1605_p4 = scmp.lt.s32.totalorder %s1863_s11, %s1603_s8 }
  0x56   : > { %p1600_p2 = pnand %p1598_p12, %p1584_p0  ;;  %p1606_p13 = scmp.lt.s32.totalorder %s1604_s10, %s1597_s30 }
  0x58   : > { %p1601_p5 = pneg %p1600_p2  ;;  %p1607_p6 = por %p1606_p13, %p1605_p4 }
  0x5a   : > { %p1608_p10 = pnand %p1607_p6, %p1601_p5 }
  0x5c   : > { %1611 = shalt.err (!%p1608_p10)
}
  0x5d   : > { %s1689_s12 = smov 896   ;;  %s1690_s13 = smov 56  }
  0x5e   : > { %1418 = dma.hbm_to_vmem [thread:$0]  (!%p1854_p11), %s1861_s9, 3584, %s1863_s11, %s1865_s28, %s1689_s12, %s1689_s12, %s1690_s13  }
  0x5f   : > { %232 = sbr.rel (%p1764_p8) target bundleno = 638 (0x27e), region = 40  ;;  %s1896_s29 = sand.u32 (!%p1764_p8), 1, %s1674_s19  }
  0x60   : > { %s1395_s17 = smul.u32 (!%p1764_p8), 224, %s1896_s29  ;;  %s235_s6 = scalar_lea.sflag (!%p1764_p8), [#allocation3], %s1896_s29 }
  0x61   : > { %p2011_p4 = scmp.ne.s32.totalorder (!%p1764_p8), %s2004_s24, 0 }
  0x62   : > { %s1900_s16 = scalar_lea.vmem (!%p1764_p8), [#allocation2], %s1395_s17 }
  0x66   : > { %1657 = dma.done.wait (%p2011_p4), %s235_s6, 3584  }
  0x67   : > { %1659 = vsyncadd (%p2011_p4), %s235_s6, 4294963712  ;;  %p2012_p5 = scmp.eq.s32.totalorder %s1745_s22, 0 }
  0x69   : > { %1661 = dma.done.wait (%p2012_p5), [#allocation6], 7296   ;;  %p2013_p8 = pmov %p2012_p5 }
  0x6a   : > { %v1469_v0 = vld [vmem:[#allocation5 + $0x40] sm:$0xff]   ;;  %v1473_v4 = vld [vmem:[#allocation5 + $0x48] sm:$0xff]   ;;  %v1477_v8 = vld [vmem:[#allocation5 + $0x50] sm:$0xff]   ;;  %vm717_vm0 = vcmask 130048   ;;  %s1183_s15 = sshll.u32 %s1896_s29, 4  ;;  %s1258_s7 = sshll.u32 %s1745_s22, 8 }
  0x6b   : > { %1663 = vsyncadd (%p2013_p8), [#allocation6], 4294960000  ;;  %v1470_v1 = vld [vmem:[#allocation5] sm:$0xff]   ;;  %1270 = vmatprep.subr.bf16.mxu0 %v1469_v0  ;;  %v1474_v5 = vld [vmem:[#allocation5 + $0x8] sm:$0xff]   ;;  %s272_s28 = scalar_lea.vmem [#allocation8], %s1183_s15  ;;  %s1951_s12 = scalar_lea.hbm %s2000_s5, %s1258_s7 }
  0x6c   : > { %v1471_v2 = vld [vmem:[#allocation5 + $0xc0] sm:$0xff]   ;;  %1271 = vmatpush3.bf16.msra.mxu0 %v1470_v1  ;;  %v1475_v6 = vld [vmem:[#allocation5 + $0xc8] sm:$0xff]   ;;  %v1478_v9 = vld [vmem:[#allocation5 + $0x10] sm:$0xff]   ;;  %s1080_s30 = sshll.u32 %s272_s28, 4  ;;  %s1067_s13 = scalar_lea.sflag [#allocation4], %s1896_s29  ;;  %s1946_s30 = int_to_ptr.vmem [resolvable:$true] %s1080_s30 }
  0x6d   : > { %v1472_v3 = vld [vmem:[#allocation5 + $0x80] sm:$0xff]   ;;  %1298 = vmatprep.subr.bf16.mxu1 %v1471_v2  ;;  %1272 = vmatprep.subr.bf16.mxu0 %v1473_v4  ;;  %v1476_v7 = vld [vmem:[#allocation5 + $0x88] sm:$0xff]   ;;  %v1479_v10 = vld [vmem:[#allocation5 + $0xd0] sm:$0xff]   ;;  %s1612_s17 = scalar_lea.vmem %s1946_s30, 256  ;;  %p2014_p0 = scmp.ne.s32.totalorder %s2009_s23, 0 }
  0x6e   : > { %1299 = vmatpush3.bf16.msra.mxu1 %v1472_v3  ;;  %v1480_v11 = vld [vmem:[#allocation5 + $0x90] sm:$0xff]   ;;  %v1481_v12 = vld [vmem:[#allocation5 + $0x58] sm:$0xff]   ;;  %v1485_v16 = vld [vmem:[#allocation5 + $0x60] sm:$0xff]   ;;  %p1613_p11 = scmp.ne.s32.totalorder %s1946_s30, %s1612_s17  ;;  %s1691_s22 = smov [#allocation8]  }
  0x6f   : > { %1300 = vmatprep.subr.bf16.mxu1 %v1475_v6  ;;  %v1482_v13 = vld [vmem:[#allocation5 + $0x18] sm:$0xff]   ;;  %v1486_v17 = vld [vmem:[#allocation5 + $0x20] sm:$0xff]   ;;  %v1489_v20 = vld [vmem:[#allocation5 + $0x68] sm:$0xff]   ;;  %s1616_s6 = sshll.u32 %s1691_s22, 4  ;;  %s1617_s6 = int_to_ptr.vmem [resolvable:$false] %s1616_s6 }
  0x70   : > { %1273 = vmatpush3.bf16.msra.mxu0 %v1474_v5  ;;  %v1483_v14 = vld [vmem:[#allocation5 + $0xd8] sm:$0xff]   ;;  %v1487_v18 = vld [vmem:[#allocation5 + $0xe0] sm:$0xff]   ;;  %v1490_v21 = vld [vmem:[#allocation5 + $0x28] sm:$0xff]   ;;  %p1614_p1 = pnand %p1613_p11, %p2014_p0  ;;  %p1619_p7 = scmp.lt.s32.totalorder %s1946_s30, %s1617_s6 }
  0x71   : > { %1274 = vmatprep.subr.bf16.mxu0 %v1477_v8  ;;  %v1484_v15 = vld [vmem:[#allocation5 + $0x98] sm:$0xff]   ;;  %v1488_v19 = vld [vmem:[#allocation5 + $0xa0] sm:$0xff]   ;;  %v1491_v22 = vld [vmem:[#allocation5 + $0xe8] sm:$0xff]  }
  0x72   : > { %1301 = vmatpush3.bf16.msra.mxu1 %v1476_v7  ;;  %v1492_v23 = vld [vmem:[#allocation5 + $0xa8] sm:$0xff]   ;;  %v1493_v24 = vld [vmem:[#allocation5 + $0x70] sm:$0xff]   ;;  %v1497_v28 = vld [vmem:[#allocation5 + $0x78] sm:$0xff]   ;;  %p1615_p3 = pneg %p1614_p1 }
  0x73   : > { %1302 = vmatprep.subr.bf16.mxu1 %v1479_v10  ;;  %v1494_v25 = vld [vmem:[#allocation5 + $0x30] sm:$0xff]   ;;  %v1498_v29 = vld [vmem:[#allocation5 + $0x38] sm:$0xff]   ;;  %v277_v31 = vld [vmem:[%s1900_s16 + $0x8] sm:$0xff] }
  0x74   : > { %1275 = vmatpush3.bf16.msra.mxu0 %v1478_v9  ;;  %v1495_v26 = vld [vmem:[#allocation5 + $0xf0] sm:$0xff]   ;;  %v1499_v30 = vld [vmem:[#allocation5 + $0xf8] sm:$0xff]   ;;  %v284_v32 = vld [vmem:[%s1900_s16 + $0x40] sm:$0xff] }
  0x75   : > { %1276 = vmatprep.subr.bf16.mxu0 %v1481_v12  ;;  %v1496_v27 = vld [vmem:[#allocation5 + $0xb0] sm:$0xff]   ;;  %v305_v33 = vpack.c.bf16 %v284_v32, %v277_v31  ;;  %v1500_v34 = vld [vmem:[#allocation5 + $0xb8] sm:$0xff]   ;;  %v276_v35 = vld [vmem:[%s1900_s16] sm:$0xff] }
  0x76   : > { %1303 = vmatpush3.bf16.msra.mxu1 %v1480_v11  ;;  %v283_v36 = vld [vmem:[%s1900_s16 + $0x38] sm:$0xff]  ;;  %v1501_v38 = vld [vmem:[#allocation5 + $0x140] sm:$0xff]   ;;  %v286_v40 = vld [vmem:[%s1900_s16 + $0x50] sm:$0xff] }
  0x77   : > { %1304 = vmatprep.subr.bf16.mxu1 %v1483_v14  ;;  %756 = vmatprep.mubr.bf16.mxu0 %v305_v33  ;;  %v304_v37 = vpack.c.bf16 %v283_v36, %v276_v35  ;;  %v279_v39 = vld [vmem:[%s1900_s16 + $0x18] sm:$0xff]  ;;  %v1502_v42 = vld [vmem:[#allocation5 + $0x100] sm:$0xff]   ;;  %v278_v43 = vld [vmem:[%s1900_s16 + $0x10] sm:$0xff] }
  0x78   : > { %1277 = vmatpush3.bf16.msra.mxu0 %v1482_v13  ;;  %v307_v41 = vpack.c.bf16 %v286_v40, %v279_v39  ;;  %v285_v44 = vld [vmem:[%s1900_s16 + $0x48] sm:$0xff]  ;;  %v1505_v48 = vld [vmem:[#allocation5 + $0x150] sm:$0xff]   ;;  %v1507_v50 = vld [vmem:[#allocation5 + $0x158] sm:$0xff]  }
  0x79   : > { %1278 = vmatprep.subr.bf16.mxu0 %v1485_v16  ;;  %v306_v45 = vpack.c.bf16 %v285_v44, %v278_v43  ;;  %v1503_v46 = vld [vmem:[#allocation5 + $0x148] sm:$0xff]   ;;  %v1506_v49 = vld [vmem:[#allocation5 + $0x110] sm:$0xff]   ;;  %v1508_v51 = vld [vmem:[#allocation5 + $0x118] sm:$0xff]  }
  0x7a   : > { %1305 = vmatpush3.bf16.msra.mxu1 %v1484_v15  ;;  %805 = vmatprep.mubr.bf16.mxu1 %v307_v41  ;;  %v1504_v47 = vld [vmem:[#allocation5 + $0x108] sm:$0xff]   ;;  %v291_v52 = vld [vmem:[%s1900_s16 + $0x78] sm:$0xff]  ;;  %v298_v53 = vld [vmem:[%s1900_s16 + $0xb0] sm:$0xff] }
  0x7b   : > { %1306 = vmatprep.subr.bf16.mxu1 %v1487_v18  ;;  %v1509_v54 = vld [vmem:[#allocation5 + $0x160] sm:$0xff]   ;;  %v312_v55 = vpack.c.bf16 %v298_v53, %v291_v52  ;;  %v290_v56 = vld [vmem:[%s1900_s16 + $0x70] sm:$0xff]  ;;  %v297_v57 = vld [vmem:[%s1900_s16 + $0xa8] sm:$0xff] }
  0x7c   : > { %1279 = vmatpush3.bf16.msra.mxu0 %v1486_v17  ;;  %v1510_v58 = vld [vmem:[#allocation5 + $0x120] sm:$0xff]   ;;  %v311_v59 = vpack.c.bf16 %v297_v57, %v290_v56  ;;  %v293_v60 = vld [vmem:[%s1900_s16 + $0x88] sm:$0xff]  ;;  %v299_v0 = vld [vmem:[%s1900_s16 + $0xb8] sm:$0xff] }
  0x7d   : > { %1280 = vmatprep.subr.bf16.mxu0 %v1489_v20  ;;  %v300_v61 = vld [vmem:[%s1900_s16 + $0xc0] sm:$0xff]  ;;  %v1511_v1 = vld [vmem:[#allocation5 + $0x168] sm:$0xff]   ;;  %v1513_v5 = vld [vmem:[#allocation5 + $0x170] sm:$0xff]  }
  0x7e   : > { %1307 = vmatpush3.bf16.msra.mxu1 %v1488_v19  ;;  %v292_v62 = vld [vmem:[%s1900_s16 + $0x80] sm:$0xff]  ;;  %v314_v63 = vpack.c.bf16 %v300_v61, %v293_v60  ;;  %v1512_v4 = vld [vmem:[#allocation5 + $0x128] sm:$0xff]   ;;  %v282_v9 = vld [vmem:[%s1900_s16 + $0x30] sm:$0xff] }
  0x7f   : > { %1308 = vmatprep.subr.bf16.mxu1 %v1491_v22  ;;  %v313_v2 = vpack.c.bf16 %v299_v0, %v292_v62  ;;  %v1515_v3 = vld [vmem:[#allocation5 + $0x180] sm:$0xff]   ;;  %v281_v6 = vld [vmem:[%s1900_s16 + $0x28] sm:$0xff]  ;;  %v303_v12 = vld [vmem:[%s1900_s16 + $0xd8] sm:$0xff] }
  0x80   : > { %1281 = vmatpush3.bf16.msra.mxu0 %v1490_v21  ;;  %v288_v7 = vld [vmem:[%s1900_s16 + $0x60] sm:$0xff]  ;;  %v289_v10 = vld [vmem:[%s1900_s16 + $0x68] sm:$0xff]  ;;  %v1514_v13 = vld [vmem:[#allocation5 + $0x130] sm:$0xff]  }
  0x81   : > { %1282 = vmatprep.subr.bf16.mxu0 %v1493_v24  ;;  %v309_v8 = vpack.c.bf16 %v288_v7, %v281_v6  ;;  %v296_v11 = vld [vmem:[%s1900_s16 + $0xa0] sm:$0xff]  ;;  %v310_v14 = vpack.c.bf16 %v289_v10, %v282_v9  ;;  %v1516_v16 = vld [vmem:[#allocation5 + $0x178] sm:$0xff]   ;;  %v302_v21 = vld [vmem:[%s1900_s16 + $0xd0] sm:$0xff] }
  0x82   : > { %1309 = vmatpush3.bf16.msra.mxu1 %v1492_v23  ;;  %v317_v15 = vpack.c.bf16 %v303_v12, %v296_v11  ;;  %v1517_v17 = vld [vmem:[#allocation5 + $0x138] sm:$0xff]   ;;  %v280_v18 = vld [vmem:[%s1900_s16 + $0x20] sm:$0xff]  ;;  %v294_v24 = vld [vmem:[%s1900_s16 + $0x90] sm:$0xff] }
  0x83   : > { %1310 = vmatprep.subr.bf16.mxu1 %v1495_v26  ;;  %v287_v19 = vld [vmem:[%s1900_s16 + $0x58] sm:$0xff]  ;;  %v1522_v31 = vld [vmem:[#allocation7 + $0x20] sm:$0xff]   ;;  %v1523_v32 = vld [vmem:[#allocation7 + $0x28] sm:$0xff]  }
  0x84   : > { %1283 = vmatpush3.bf16.msra.mxu0 %v1494_v25  ;;  %v295_v20 = vld [vmem:[%s1900_s16 + $0x98] sm:$0xff]  ;;  %v308_v22 = vpack.c.bf16 %v287_v19, %v280_v18  ;;  %v301_v25 = vld [vmem:[%s1900_s16 + $0xc8] sm:$0xff]  ;;  %v1184_v36 = vld [vmem:[%s1997_s2] ss:$0 sm:$0xff]  ;;  %s1618_s16 = scalar_lea.vmem %s1617_s6, 512 }
  0x85   : > { %1284 = vmatprep.subr.bf16.mxu0 %v1497_v28  ;;  %v316_v23 = vpack.c.bf16 %v302_v21, %v295_v20  ;;  %v315_v26 = vpack.c.bf16 %v301_v25, %v294_v24  ;;  %v1519_v28 = vld [vmem:[#allocation7 + $0x8] sm:$0xff]   ;;  %v1524_v33 = vld [vmem:[#allocation7 + $0x30] sm:$0xff]   ;;  %p1620_p9 = scmp.lt.s32.totalorder %s1618_s16, %s1612_s17 }
  0x86   : > { %1311 = vmatpush3.bf16.msra.mxu1 %v1496_v27  ;;  %v1518_v27 = vld [vmem:[#allocation7] sm:$0xff]  }
  0x87   : > { %1312 = vmatprep.subr.bf16.mxu1 %v1499_v30  ;;  %v1521_v30 = vld [vmem:[#allocation7 + $0x18] sm:$0xff]   ;;  %p1621_p12 = por %p1620_p9, %p1619_p7 }
  0x88   : > { %1285 = vmatpush3.bf16.msra.mxu0 %v1498_v29  ;;  %v1520_v29 = vld [vmem:[#allocation7 + $0x10] sm:$0xff]  }
  0x89   : > { %1326 = vmatprep.subr.bf16.mxu0 %v1501_v38  ;;  %p1622_p2 = pnand %p1621_p12, %p1615_p3 }
  0x8a   : > { %1313 = vmatpush3.bf16.msra.mxu1 %v1500_v34  ;;  %v1525_v34 = vld [vmem:[#allocation7 + $0x38] sm:$0xff]  }
  0x8b   : > { %757 = vmatmul.mubr.bf16.vlgmr.msra.gmra.mrb[0].mxu0 %v304_v37  ;;  %1367 = vmatprep.subr.bf16.mxu1 %v1515_v3 }
  0x8c   : > { %1327 = vmatpush3.bf16.msra.mxu0 %v1502_v42  ;;  %764 = vmatprep.mubr.bf16.mxu0 %v312_v55 }
  0x8d   : > { %806 = vmatmul.mubr.bf16.vlgmr.msra.gmra.mrb[0].mxu1 %v306_v45  ;;  %1328 = vmatprep.subr.bf16.mxu0 %v1503_v46 }
  0x8e   : > { %813 = vmatprep.mubr.bf16.mxu1 %v314_v63  ;;  %1368 = vmatpush3.bf16.msra.mxu1 %v1515_v3 }
  0x8f   : > { %1373 = vmatprep.subr.bf16.mxu1 %v1518_v27 }
  0x90   : > { %1329 = vmatpush3.bf16.msra.mxu0 %v1504_v47 }
  0x91   : > { %1330 = vmatprep.subr.bf16.mxu0 %v1505_v48 }
  0x93   : > { %765 = vmatmul.mubr.bf16.gmra.mrb[4].mxu0 %v311_v59 }
  0x94   : > { %1331 = vmatpush3.bf16.msra.mxu0 %v1506_v49  ;;  %854 = vmatprep.mubr.bf16.mxu0 %v309_v8 }
  0x95   : > { %1332 = vmatprep.subr.bf16.mxu0 %v1507_v50  ;;  %814 = vmatmul.mubr.bf16.gmra.mrb[4].mxu1 %v313_v2 }
  0x96   : > { %1369 = vmatprep.mubr.msk.bf16.mxu1 %vm717_vm0, %v310_v14 }
  0x98   : > { %1333 = vmatpush3.bf16.msra.mxu0 %v1508_v51 }
  0x99   : > { %1334 = vmatprep.subr.bf16.mxu0 %v1509_v54 }
  0x9c   : > { %1335 = vmatpush3.bf16.msra.mxu0 %v1510_v58 }
  0x9d   : > { %1336 = vmatprep.subr.bf16.mxu0 %v1511_v1  ;;  %1370 = vmatmul.mubr.msk.bf16.vlgmr.msra.gmra.mrb[8].mxu1 %vm717_vm0, %v317_v15 }
  0x9e   : > { %1374 = vmatpush3.bf16.msra.mxu1 %v1518_v27 }
  0x9f   : > { %1375 = vmatprep.subr.bf16.mxu1 %v1519_v28 }
  0xa0   : > { %1337 = vmatpush3.bf16.msra.mxu0 %v1512_v4 }
  0xa1   : > { %1338 = vmatprep.subr.bf16.mxu0 %v1513_v5 }
  0xa2   : > { %1376 = vmatpush3.bf16.msra.mxu1 %v1519_v28 }
  0xa3   : > { %1377 = vmatprep.subr.bf16.mxu1 %v1520_v29 }
  0xa4   : > { %1339 = vmatpush3.bf16.msra.mxu0 %v1514_v13 }
  0xa5   : > { %1340 = vmatprep.subr.bf16.mxu0 %v1516_v16 }
  0xa6   : > { %1378 = vmatpush3.bf16.msra.mxu1 %v1520_v29 }
  0xa7   : > { %1379 = vmatprep.subr.bf16.mxu1 %v1521_v30 }
  0xa8   : > { %1341 = vmatpush3.bf16.msra.mxu0 %v1517_v17 }
  0xaa   : > { %1380 = vmatpush3.bf16.msra.mxu1 %v1521_v30 }
  0xab   : > { %855 = vmatmul.mubr.bf16.vlgmr.msra.gmra.mrb[8].mxu0 %v308_v22  ;;  %1381 = vmatprep.subr.bf16.mxu1 %v1522_v31 }
  0xac   : > { %862 = vmatprep.mubr.bf16.mxu0 %v316_v23 }
  0xae   : > { %1382 = vmatpush3.bf16.msra.mxu1 %v1522_v31 }
  0xaf   : > { %1383 = vmatprep.subr.bf16.mxu1 %v1523_v32 }
  0xb2   : > { %1384 = vmatpush3.bf16.msra.mxu1 %v1523_v32 }
  0xb3   : > { %863 = vmatmul.mubr.bf16.gmra.mrb[12].mxu0 %v315_v26  ;;  %1385 = vmatprep.subr.bf16.mxu1 %v1524_v33 }
  0xb6   : > { %1386 = vmatpush3.bf16.msra.mxu1 %v1524_v33 }
  0xb7   : > { %1387 = vmatprep.subr.bf16.mxu1 %v1525_v34 }
  0xba   : > { %1388 = vmatpush3.bf16.msra.mxu1 %v1525_v34 }
 0x15e   : > { %v1286_v35 = vpop.f32.mrb[0].mxu0 }
 0x15f   : > { %v1287_v37 = vpop.f32.mrb[1].mxu0 }
 0x160   : > { %v1288_v38 = vadd.f32 %v1287_v37, %v1286_v35  ;;  %v1289_v39 = vpop.f32.mrb[2].mxu0  ;;  %v1314_v40 = vpop.f32.mrb[0].mxu1  ;;  %v1236_v35 = vld [vmem:[%s1999_s4] ss:$0 sm:$0xff] }
 0x161   : > { %v1290_v41 = vpop.f32.mrb[3].mxu0  ;;  %v1315_v44 = vpop.f32.mrb[1].mxu1 }
 0x162   : > { %v759_v42 = vadd.f32 %v1288_v38, %v1184_v36  ;;  %v1291_v43 = vadd.f32 %v1290_v41, %v1289_v39  ;;  %v1316_v45 = vadd.f32 %v1315_v44, %v1314_v40  ;;  %v1317_v46 = vpop.f32.mrb[2].mxu1 }
 0x163   : > { %v1318_v48 = vpop.f32.mrb[3].mxu1 }
 0x164   : > { %v762_v47 = vadd.f32 %v1291_v43, %v1184_v36  ;;  %v808_v49 = vadd.f32 %v1316_v45, %v759_v42  ;;  %v1319_v50 = vadd.f32 %v1318_v48, %v1317_v46 }
 0x166   : > { %v811_v51 = vadd.f32 %v1319_v50, %v762_v47  ;;  %v1292_v52 = vpop.f32.mrb[4].mxu0 }
 0x167   : > { %v1293_v53 = vpop.f32.mrb[5].mxu0 }
 0x168   : > { %v1294_v54 = vadd.f32 %v1293_v53, %v1292_v52  ;;  %v1295_v55 = vpop.f32.mrb[6].mxu0  ;;  %v1320_v56 = vpop.f32.mrb[4].mxu1 }
 0x169   : > { %v1296_v57 = vpop.f32.mrb[7].mxu0  ;;  %v1321_v58 = vpop.f32.mrb[5].mxu1 }
 0x16a   : > { %v767_v59 = vadd.f32 %v1294_v54, %v1184_v36  ;;  %v1297_v60 = vadd.f32 %v1296_v57, %v1295_v55  ;;  %v1322_v61 = vadd.f32 %v1321_v58, %v1320_v56  ;;  %v1323_v62 = vpop.f32.mrb[6].mxu1 }
 0x16b   : > { %v1324_v63 = vpop.f32.mrb[7].mxu1 }
 0x16c   : > { %v770_v0 = vadd.f32 %v1297_v60, %v1184_v36  ;;  %v816_v1 = vadd.f32 %v1322_v61, %v767_v59  ;;  %v1325_v2 = vadd.f32 %v1324_v63, %v1323_v62 }
 0x16e   : > { %v819_v3 = vadd.f32 %v1325_v2, %v770_v0 }
 0x170   : > { %v1371_v4 = vpop.f32.mrb[8].mxu1 }
 0x171   : > { %v905_v5 = vpop.f32.mrb[9].mxu1 }
 0x172   : > { %v1372_v6 = vpop.f32.mrb[10].mxu1 }
 0x173   : > { %v908_v7 = vpop.f32.mrb[11].mxu1 }
 0x17e   : > { %v1342_v8 = vpop.f32.mrb[8].mxu0 }
 0x17f   : > { %v1343_v9 = vpop.f32.mrb[9].mxu0 }
 0x180   : > { %v1344_v10 = vadd.f32 %v1343_v9, %v1342_v8  ;;  %v1345_v11 = vpop.f32.mrb[10].mxu0 }
 0x181   : > { %v1346_v12 = vpop.f32.mrb[11].mxu0 }
 0x182   : > { %v1347_v13 = vadd.f32 %v1346_v12, %v1345_v11  ;;  %v857_v14 = vadd.f32 %v1344_v10, %v808_v49 }
 0x184   : > { %v906_v15 = vadd.f32 %v905_v5, %v857_v14  ;;  %v860_v16 = vadd.f32 %v1347_v13, %v811_v51 }
 0x186   : > { %v909_v17 = vadd.f32 %v908_v7, %v860_v16  ;;  %v1348_v18 = vpop.f32.mrb[12].mxu0  ;;  %v920_v20 = vmax.f32 %v906_v15, 0.0 }
 0x187   : > { %v1349_v19 = vpop.f32.mrb[13].mxu0 }
 0x188   : > { %v921_v21 = vmax.f32 %v909_v17, 0.0  ;;  %v1350_v22 = vadd.f32 %v1349_v19, %v1348_v18  ;;  %v1351_v23 = vpop.f32.mrb[14].mxu0 }
 0x189   : > { %v1352_v24 = vpop.f32.mrb[15].mxu0 }
 0x18a   : > { %v924_v25 = vpack.c.bf16 %v921_v21, %v920_v20  ;;  %v865_v26 = vadd.f32 %v1350_v22, %v816_v1  ;;  %v1353_v27 = vadd.f32 %v1352_v24, %v1351_v23 }
 0x18c   : > { %v914_v28 = vadd.f32 %v1371_v4, %v865_v26  ;;  %v868_v29 = vadd.f32 %v1353_v27, %v819_v3  ;;  %1389 = vmatprep.mubr.bf16.mxu1 %v924_v25 }
 0x18e   : > { %v917_v30 = vadd.f32 %v1372_v6, %v868_v29  ;;  %v922_v31 = vmax.f32 %v914_v28, 0.0 }
 0x190   : > { %v923_v32 = vmax.f32 %v917_v30, 0.0 }
 0x192   : > { %v925_v33 = vpack.c.bf16 %v923_v32, %v922_v31 }
 0x194   : > { %1390 = vmatmul.mubr.bf16.vlgmr.msra.gmra.mrb[12].mxu1 %v925_v33 }
 0x267   : > { %v1391_v34 = vpop.f32.mrb[12].mxu1 }
 0x268   : > { %v1031_v36 = vpop.f32.mrb[13].mxu1  ;;  %v1040_v38 = vadd.f32 %v1391_v34, %v1236_v35 }
 0x269   : > { %v1392_v37 = vpop.f32.mrb[14].mxu1  ;;  %v1032_v41 = vadd.f32 %v1236_v35, %v1031_v36 }
 0x26a   : > { %v1043_v39 = vadd.f32 %v1392_v37, %v1236_v35  ;;  %v1034_v40 = vpop.f32.mrb[15].mxu1 }
 0x26b   : > { %v1035_v42 = vadd.f32 %v1236_v35, %v1034_v40 }
 0x26c   : > { %v1267_v43 = vpack.c.bf16 %v1043_v39, %v1040_v38 }
 0x26d   : > { %v1262_v44 = vpack.c.bf16 %v1035_v42, %v1032_v41 }
 0x26e   : > { %1269 = vst [vmem:[%s272_s28 + $0x8] sm:$0xff] %v1267_v43  }
 0x26f   : > { %1263 = vst [vmem:[%s272_s28] sm:$0xff] %v1262_v44  }
 0x270   : > { %1625 = shalt.err (!%p1622_p2)
}
 0x271   : > { %s1626_s24 = scalar_lea.hbm %s1951_s12, 256  ;;  %s1630_s9 = scalar_lea.hbm %s2000_s5, 512 }
 0x272   : > { %p1627_p13 = scmp.ne.s32.totalorder %s1951_s12, %s1626_s24  ;;  %p1631_p4 = scmp.lt.u32.totalorder %s1951_s12, %s2000_s5 }
 0x273   : > { %p1632_p5 = scmp.lt.u32.totalorder %s1630_s9, %s1626_s24  ;;  %p1634_p11 = scmp.lt.u32.totalorder %s1626_s24, %s1951_s12 }
 0x274   : > { %p1628_p6 = pnand %p1627_p13, %p2014_p0 }
 0x275   : > { %p1633_p8 = por %p1632_p5, %p1631_p4 }
 0x276   : > { %p1629_p10 = pneg %p1628_p6 }
 0x277   : > { %p1635_p1 = por %p1634_p11, %p1633_p8 }
 0x279   : > { %p1636_p3 = pnand %p1635_p1, %p1629_p10 }
 0x27b   : > { %1639 = shalt.err (!%p1636_p3)
}
 0x27c   : > { %s1692_s7 = smov 64   ;;  %s1693_s8 = smov 4  }
 0x27d   : > { %1406 = dma.vmem_to_hbm [thread:$0]  (%p2014_p0), %s1946_s30, 256, %s1951_s12, %s1067_s13, %s1692_s7, %s1692_s7, %s1693_s8  }
 0x27e PF: > { %s1095_s10 = sand.u32 1, %s1670_s18   ;;  %p2015_p7 = scmp.ne.s32.totalorder %s2005_s25, 0 }
 0x27f   : > { %p2016_p9 = scmp.ge.s32.totalorder %s1682_s21, 2  ;;  %s1096_s17 = scalar_lea.sflag [#allocation4], %s1095_s10 }
 0x281   : > { %p1420_p12 = pnand %p2016_p9, %p2015_p7 }
 0x283   : > { %1665 = dma.done.wait (!%p1420_p12), %s1096_s17, 256  }
 0x284   : > { %1667 = vsyncadd (!%p1420_p12), %s1096_s17, 4294967040  ;;  %p19_p2 = scmp.ge.s32.totalorder %s1834_s14, 4   ;;  %s2017_s18 = smov %s1674_s19 }
 0x285   : > { %s2018_s19 = smov %s1678_s20  ;;  %s2019_s20 = smov %s1850_s27 }
 0x286   : > { %s2020_s21 = smov %s1834_s14  ;;  %21 = sbr.rel (!%p19_p2) target bundleno = 6 (0x6), region = 93 }
 0x28d   :  { %1101 = vsyncpa [#allocation3], 1 }
 0x28e   :  { %1103 = vsyncpa [#allocation3 + $0x1], 1 }
 0x28f   :  { %1104 = vsyncpa [#allocation6], 1 }
 0x290   :  { %1105 = vsyncpa [#allocation4], 1 }
 0x291   :  { %1107 = vsyncpa [#allocation4 + $0x1], 1 }

</bundles_post_ra>
